<compile_context>
chip_gen: v7x
topology: tpu7x:2x2x1
jax: 0.10.0
libtpu: 0.0.40
codegen_flags: <defaults>
</compile_context>

<pallas_src>
import jax
import jax.numpy as jnp
from jax.experimental import pallas as pl
from jax.experimental.pallas import tpu as pltpu


def _chomp_copy_kernel(x_ref, o_ref):
    # x_ref / o_ref : (TR, TL) VMEM tiles over the kept prefix.  Input and
    # output tiles share the same block index -> straight copy (pure HBM BW).
    o_ref[...] = x_ref[...]


def _round_up(n: int, m: int) -> int:
    return ((n + m - 1) // m) * m


def chomp1d(x: jax.Array, chomp_size: int) -> jax.Array:
    """x: (N, C, L) -> (N, C, L - chomp_size), matching x[:, :, :-chomp_size]."""
    assert chomp_size > 0, "chomp_size must be positive (PyTorch :-0 slices to empty)"
    N, C, L = x.shape
    L_out = L - chomp_size
    assert L_out > 0, "chomp_size must be smaller than the time dimension"

    # Fast path: lane-sparse outputs (< 128 kept time steps) would hit masked
    # partial stores on every tile -- let XLA do the slice instead.
    if L_out < 128:
        return x[:, :, :L_out]

    # Flatten batch x channel into one row axis; reshape of leading dims is free.
    R = N * C
    x2 = x.reshape(R, L)

    # Sublane packing by dtype width: f32 -> 8, bf16/f16 -> 16, int8/fp8 -> 32.
    itemsize = jnp.dtype(x.dtype).itemsize
    sublane = {4: 8, 2: 16, 1: 32}.get(itemsize, 8)

    # --- Tile sizing by byte budget (~4 MiB per tile buffer) ---------------
    TILE_BYTES = 4 * 1024 * 1024

    # Time tile: lane-dense (multiple of 128), sized so 512 rows still fit the
    # budget (f32 -> 2048, bf16 -> 4096, int8 -> 8192 lanes).
    tl_budget = max(128, (TILE_BYTES // (512 * itemsize)) // 128 * 128)
    TL = min(tl_budget, _round_up(L_out, 128))

    # Row tile: fill the remaining budget, multiple of the sublane packing.
    tr_budget = max(sublane, (TILE_BYTES // (TL * itemsize)) // sublane * sublane)
    TR = min(tr_budget, _round_up(R, sublane))

    # Guarantee >= 2 grid steps along a parallel axis when possible so v7x's
    # second TensorCore has work (a (1, 1) grid wastes half the chip there).
    if pl.cdiv(R, TR) == 1 and pl.cdiv(L_out, TL) == 1 and R > sublane:
        TR = _round_up(pl.cdiv(R, 2), sublane)

    grid = (pl.cdiv(R, TR), pl.cdiv(L_out, TL))

    # Double-buffered input + output footprint; raise scoped VMEM past v5e's
    # 16 MiB default but keep comfortable headroom under v7x's 64 MiB physical.
    footprint = 4 * TR * TL * itemsize
    vmem_limit = min(48 * 1024 * 1024, max(32 * 1024 * 1024, 2 * footprint))

    out2 = pl.pallas_call(
        _chomp_copy_kernel,
        out_shape=jax.ShapeDtypeStruct((R, L_out), x.dtype),
        grid_spec=pltpu.PrefetchScalarGridSpec(
            num_scalar_prefetch=0,
            grid=grid,
            # Same block shape + index map on input and output: the grid only
            # spans the first L_out time steps.  The ragged last tile (rows or
            # time) may read a little past the kept region / array end, which
            # Pallas clamps; the corresponding output lanes are masked on
            # store, so semantics match x[:, :, :-chomp_size] exactly.
            in_specs=[pl.BlockSpec((TR, TL), lambda r, t: (r, t))],
            out_specs=pl.BlockSpec((TR, TL), lambda r, t: (r, t)),
        ),
        compiler_params=pltpu.CompilerParams(
            dimension_semantics=("parallel", "parallel"),
            vmem_limit_bytes=vmem_limit,
        ),
    )(x2)

    return out2.reshape(N, C, L_out)


if __name__ == "__main__":
    key = jax.random.PRNGKey(0)

    # Case 1: the module's nominal small shape (N=2, C=4, L=16, chomp=3).
    # L_out = 13 < 128 -> exercises the lane-sparse XLA fast path.
    N, C, L, chomp = 2, 4, 16, 3
    x_small = jax.random.normal(key, (N, C, L), dtype=jnp.float32)
    y_small = jax.block_until_ready(chomp1d(x_small, chomp))
    assert y_small.shape == (N, C, L - chomp), y_small.shape
    assert y_small.dtype == x_small.dtype
    assert jnp.array_equal(y_small, x_small[:, :, :-chomp]), "fast-path mismatch"

    # Case 2: lane-friendly length that exercises the Pallas copy kernel,
    # with ragged rows (R = 10, not a multiple of 8) and ragged time
    # (L_out = 700, not a multiple of 128) to hit the masked-store edges.
    N2, C2, L2, chomp2 = 2, 5, 703, 3
    x_big = jax.random.normal(jax.random.PRNGKey(0), (N2, C2, L2), dtype=jnp.float32)
    y_big = jax.block_until_ready(chomp1d(x_big, chomp2))
    assert y_big.shape == (N2, C2, L2 - chomp2), y_big.shape
    assert y_big.dtype == x_big.dtype
    assert jnp.array_equal(y_big, x_big[:, :, :-chomp2]), "Pallas chomp output mismatch"

    print("KERNEL_OK")
</pallas_src>

<mosaic_0001>
module attributes {stable_mosaic.version = 11 : i64} {
  func.func @_chomp_copy_kernel(%arg0: i32, %arg1: i32, %arg2: memref<8x768xf32, #tpu.memory_space<vmem>>, %arg3: memref<8x768xf32, #tpu.memory_space<vmem>>) attributes {dimension_semantics = [#tpu.dimension_semantics<parallel>, #tpu.dimension_semantics<parallel>], iteration_bounds = array<i64: 2, 1>, scalar_prefetch = 0 : i64, scratch_operands = 0 : i64, tpu.core_type = #tpu.core_type<tc>, window_params = [{transform_indices = @transform_0, window_bounds = array<i64: 8, 768>}, {transform_indices = @transform_1, window_bounds = array<i64: 8, 768>}]} {
    %c0 = arith.constant 0 : index
    %c0_0 = arith.constant 0 : index
    %0 = vector.load %arg2[%c0, %c0_0] : memref<8x768xf32, #tpu.memory_space<vmem>>, vector<8x768xf32>
    %c0_1 = arith.constant 0 : index
    %c0_2 = arith.constant 0 : index
    %1 = vector.load %arg3[%c0_1, %c0_2] : memref<8x768xf32, #tpu.memory_space<vmem>>, vector<8x768xf32>
    tpu.vector_store %arg3[%c0_1, %c0_2], %0 {strides = array<i32>} : memref<8x768xf32, #tpu.memory_space<vmem>>, vector<8x768xf32>,
    return
  }
  func.func @transform_0(%arg0: i32, %arg1: i32) -> (i32, i32) {
    %c0_i32 = arith.constant 0 : i32
    return %arg0, %arg1 : i32, i32
  }
  func.func @transform_1(%arg0: i32, %arg1: i32) -> (i32, i32) {
    %c0_i32 = arith.constant 0 : i32
    return %arg0, %arg1 : i32, i32
  }
}

</mosaic_0001>

<bundles_post_ra>
// kernel: tpu_custom_call.1
= control target key start
LH: loop header
LB: loop body
LE: loop exit
PB: predicated region body
PF: predicated region fallthrough
CT: control target
= control target key end

     0   :  { %6 = vsyncpa [#allocation3], 0  ;;  %s637_s0 = inlined_call_operand.hbm [shape: f32[10,703], index: 0, kind: input, shape index: {}]   ;;  %s638_s1 = inlined_call_operand.hbm [shape: f32[10,700], index: 1, kind: output, shape index: {}]  }
   0x1   :  { %8 = vsyncpa [#allocation3 + $0x1], 0 }
   0x2   :  { %9 = vsyncpa [#allocation4], 0 }
   0x3   :  { %11 = vsyncpa [#allocation4 + $0x1], 0  ;;  %s467_s6 = smov 0   ;;  %s469_s7 = smov 0  }
   0x4   :  { %s471_s8 = smov 0   ;;  %s473_s9 = smov 0  }
   0x5   :  { %s475_s10 = smov 0   ;;  %s477_s11 = smov 0  }
   0x6 LB: > { %s266_s12 = sadd.s32 4294967295, %s453_s11   ;;  %s267_s13 = sadd.s32 4294967294, %s453_s11   ;;  %s453_s11 = sphi %s477_s11, %s17_s11   ;;  %s449_s10 = sphi %s475_s10, %s653_s10   ;;  %s445_s9 = sphi %s473_s9, %s652_s9   ;;  %s441_s8 = sphi %s471_s8, %s651_s8   ;;  %s437_s7 = sphi %s469_s7, %s650_s7   ;;  %s433_s6 = sphi %s467_s6, %s649_s6  }
   0x7   : > { %s29_s14 = sadd.s32 1, %s449_s10  ;;  %s38_s15 = sadd.s32 1, %s441_s8 }
   0x8   : > { %p31_p0 = scmp.ge.s32.totalorder %s29_s14, 2  ;;  %p45_p1 = scmp.ne.s32.totalorder %s441_s8, %s437_s7 }
   0x9   : > { %p46_p2 = scmp.eq.s32.totalorder %s453_s11, 0  ;;  %p51_p3 = scmp.ne.s32.totalorder %s437_s7, %s433_s6 }
   0xa   : > { %s655_s14 = smov (%p31_p0, %s29_s14), 0  ;;  %p52_p5 = scmp.eq.s32.totalorder %s266_s12, 0 }
   0xb   : > { %p508_p4 = por %p46_p2, %p45_p1  ;;  %s33_s17 = ssub.s32 %s449_s10, %s655_s14 }
   0xc   : > { %p77_p6 = scmp.eq.s32.totalorder %s266_s12, 1  ;;  %p36_p7 = scmp.eq.s32.totalorder %s33_s17, 0 }
   0xd   : > { %p514_p8 = por %p52_p5, %p51_p3  ;;  %p83_p10 = scmp.eq.s32.totalorder %s267_s13, 1 }
   0xe   : > { %p518_p9 = por %p77_p6, %p45_p1  ;;  %p291_p13 = scmp.lt.s32.totalorder %s453_s11, 2 }
   0xf   : > { %s523_s20 = scalar_select %p36_p7, %s441_s8, %s38_s15  }
  0x10   : > { %s642_s19 = scalar_select %p518_p9, 1, 0 }
  0x11   : > { %p525_p11 = por %p83_p10, %p51_p3  ;;  %s103_s22 = sand.u32 1, %s441_s8  }
  0x12   : > { %s275_s23 = smul.u32 48, %s103_s22  ;;  %p535_p0 = pnand %p291_p13, %p508_p4 }
  0x13   : > { %s643_s21 = scalar_select %p525_p11, 1, 0 }
  0x14   : > { %s276_s24 = smul.u32 768, %s449_s10  ;;  %s107_s29 = scalar_lea.vmem [#allocation2], %s275_s23 }
  0x15   : > { %s117_s30 = sshll.u32 %s107_s29, 4  ;;  %s104_s2 = scalar_lea.sflag [#allocation3], %s103_s22  ;;  %s545_s30 = int_to_ptr.vmem [resolvable:$true] %s117_s30 }
  0x16   : > { %s543_s28 = scalar_lea.hbm %s637_s0, %s276_s24  ;;  %p343_p3 = pneg %p535_p0 }
  0x17   : > { %s341_s3 = scalar_lea.hbm %s543_s28, 768  ;;  %s346_s12 = scalar_lea.hbm %s637_s0, 1536 }
  0x18   : > { %p342_p2 = scmp.ne.s32.totalorder %s543_s28, %s341_s3  ;;  %p347_p6 = scmp.lt.u32.totalorder %s543_s28, %s637_s0 }
  0x19   : > { %p348_p7 = scmp.lt.u32.totalorder %s346_s12, %s341_s3  ;;  %p350_p13 = scmp.lt.u32.totalorder %s341_s3, %s543_s28 }
  0x1a   : > { %p344_p4 = pnand %p343_p3, %p342_p2 }
  0x1b   : > { %p349_p10 = por %p348_p7, %p347_p6 }
  0x1c   : > { %p345_p5 = pneg %p344_p4 }
  0x1d   : > { %p351_p12 = por %p350_p13, %p349_p10 }
  0x1f   : > { %p352_p1 = pnand %p351_p12, %p345_p5 }
  0x21   : > { %355 = shalt.err (!%p352_p1)
}
  0x22   : > { %s356_s16 = scalar_lea.vmem %s545_s30, 768  ;;  %s455_s17 = smov [#allocation2]  }
  0x23   : > { %p357_p2 = scmp.ne.s32.totalorder %s545_s30, %s356_s16  ;;  %s361_s22 = sshll.u32 %s455_s17, 4  ;;  %s362_s22 = int_to_ptr.vmem [resolvable:$false] %s361_s22 }
  0x24   : > { %s363_s23 = scalar_lea.vmem %s362_s22, 1536  ;;  %p364_p9 = scmp.lt.s32.totalorder %s545_s30, %s362_s22 }
  0x25   : > { %p359_p4 = pnand %p357_p2, %p343_p3  ;;  %p365_p6 = scmp.lt.s32.totalorder %s363_s23, %s356_s16 }
  0x27   : > { %p360_p11 = pneg %p359_p4  ;;  %p366_p7 = por %p365_p6, %p364_p9 }
  0x29   : > { %p367_p10 = pnand %p366_p7, %p360_p11 }
  0x2b   : > { %370 = shalt.err (!%p367_p10)
}
  0x2c   : > { %286 = dma.hbm_to_vmem [thread:$0]  (!%p535_p0), %s543_s28, 768, %s545_s30, %s104_s2  }
  0x2d   : > { %p122_p12 = scmp.lt.s32.totalorder %s453_s11, 3  ;;  %p645_p1 = scmp.ge.s32.totalorder %s453_s11, 1 }
  0x2f   : > { %p123_p3 = pnand %p645_p1, %p122_p12 }
  0x30   : > { %s576_s24 = sand.u32 (!%p123_p3), 1, %s437_s7  }
  0x31   : > { %126 = sbr.rel (%p123_p3) target bundleno = 83 (0x53), region = 24  ;;  %s129_s27 = scalar_lea.sflag (!%p123_p3), [#allocation3], %s576_s24 }
  0x32   : > { %s277_s26 = smul.u32 (!%p123_p3), 48, %s576_s24 }
  0x34   : > { %s132_s29 = scalar_lea.vmem (!%p123_p3), [#allocation2], %s277_s26 }
  0x38   : > { %424 = dma.done.wait (%p514_p8), %s129_s27, 768  }
  0x39   : > { %426 = vsyncadd (%p514_p8), %s129_s27, 4294966528  ;;  %s278_s25 = smul.u32 768, %s445_s9  ;;  %s150_s28 = scalar_lea.vmem [#allocation5], %s277_s26  ;;  %v153_v0 = vld [vmem:[%s132_s29] sm:$0xff]  ;;  %v154_v1 = vld [vmem:[%s132_s29 + $0x8] sm:$0xff] }
  0x3a   : > { %s182_s30 = sshll.u32 %s150_s28, 4  ;;  %v155_v2 = vld [vmem:[%s132_s29 + $0x10] sm:$0xff]  ;;  %159 = vst [vmem:[%s150_s28] sm:$0xff] %v153_v0  ;;  %160 = vst [vmem:[%s150_s28 + $0x8] sm:$0xff] %v154_v1  ;;  %v156_v3 = vld [vmem:[%s132_s29 + $0x18] sm:$0xff]  ;;  %s166_s9 = scalar_lea.sflag [#allocation4], %s576_s24  ;;  %s585_s30 = int_to_ptr.vmem [resolvable:$true] %s182_s30 }
  0x3b   : > { %s590_s4 = scalar_lea.hbm %s638_s1, %s278_s25  ;;  %161 = vst [vmem:[%s150_s28 + $0x10] sm:$0xff] %v155_v2  ;;  %v157_v4 = vld [vmem:[%s132_s29 + $0x20] sm:$0xff]  ;;  %v158_v5 = vld [vmem:[%s132_s29 + $0x28] sm:$0xff]  ;;  %162 = vst [vmem:[%s150_s28 + $0x18] sm:$0xff] %v156_v3  ;;  %s371_s18 = scalar_lea.vmem %s585_s30, 768 }
  0x3c   : > { %163 = vst [vmem:[%s150_s28 + $0x20] sm:$0xff] %v157_v4  ;;  %164 = vst [vmem:[%s150_s28 + $0x28] sm:$0xff] %v158_v5  ;;  %p372_p8 = scmp.ne.s32.totalorder %s585_s30, %s371_s18  ;;  %p646_p9 = scmp.ne.s32.totalorder %s642_s19, 0 }
  0x3d   : > { %s456_s5 = smov [#allocation5]  }
  0x3e   : > { %p373_p11 = pnand %p372_p8, %p646_p9  ;;  %s375_s12 = sshll.u32 %s456_s5, 4  ;;  %s376_s12 = int_to_ptr.vmem [resolvable:$false] %s375_s12 }
  0x3f   : > { %s377_s13 = scalar_lea.vmem %s376_s12, 1536  ;;  %p378_p5 = scmp.lt.s32.totalorder %s585_s30, %s376_s12 }
  0x40   : > { %p374_p0 = pneg %p373_p11  ;;  %p379_p13 = scmp.lt.s32.totalorder %s377_s13, %s371_s18 }
  0x42   : > { %p380_p2 = por %p379_p13, %p378_p5 }
  0x44   : > { %p381_p4 = pnand %p380_p2, %p374_p0 }
  0x46   : > { %384 = shalt.err (!%p381_p4)
}
  0x47   : > { %s385_s15 = scalar_lea.hbm %s590_s4, 768  ;;  %s389_s22 = scalar_lea.hbm %s638_s1, 1536 }
  0x48   : > { %p386_p6 = scmp.ne.s32.totalorder %s590_s4, %s385_s15  ;;  %p390_p12 = scmp.lt.u32.totalorder %s590_s4, %s638_s1 }
  0x49   : > { %p391_p1 = scmp.lt.u32.totalorder %s389_s22, %s385_s15  ;;  %p393_p8 = scmp.lt.u32.totalorder %s385_s15, %s590_s4 }
  0x4a   : > { %p387_p7 = pnand %p386_p6, %p646_p9 }
  0x4b   : > { %p392_p3 = por %p391_p1, %p390_p12 }
  0x4c   : > { %p388_p10 = pneg %p387_p7 }
  0x4d   : > { %p394_p11 = por %p393_p8, %p392_p3 }
  0x4f   : > { %p395_p0 = pnand %p394_p11, %p388_p10 }
  0x51   : > { %398 = shalt.err (!%p395_p0)
}
  0x52   : > { %281 = dma.vmem_to_hbm [thread:$0]  (%p646_p9), %s585_s30, 768, %s590_s4, %s166_s9  }
  0x53 PF: > { %s194_s26 = sand.u32 1, %s433_s6   ;;  %p647_p5 = scmp.ne.s32.totalorder %s643_s21, 0 }
  0x54   : > { %p648_p13 = scmp.ge.s32.totalorder %s453_s11, 2  ;;  %s195_s27 = scalar_lea.sflag [#allocation4], %s194_s26 }
  0x56   : > { %p288_p2 = pnand %p648_p13, %p647_p5 }
  0x58   : > { %428 = dma.done.wait (!%p288_p2), %s195_s27, 768  }
  0x59   : > { %430 = vsyncadd (!%p288_p2), %s195_s27, 4294966528  ;;  %s17_s11 = sadd.s32 1, %s453_s11   ;;  %s649_s6 = smov %s437_s7 }
  0x5a   : > { %p14_p4 = scmp.ge.s32.totalorder %s17_s11, 4   ;;  %s650_s7 = smov %s441_s8 }
  0x5b   : > { %s651_s8 = smov %s523_s20  ;;  %s652_s9 = smov %s449_s10 }
  0x5c   : > { %s653_s10 = smov %s655_s14  ;;  %16 = sbr.rel (!%p14_p4) target bundleno = 6 (0x6), region = 69 }
  0x63   :  { %200 = vsyncpa [#allocation3], 1 }
  0x64   :  { %202 = vsyncpa [#allocation3 + $0x1], 1 }
  0x65   :  { %203 = vsyncpa [#allocation4], 1 }
  0x66   :  { %205 = vsyncpa [#allocation4 + $0x1], 1 }

</bundles_post_ra>
